<compile_context>
chip_gen: v5e
topology: v5e:2x2
jax: 0.10.0
libtpu: 0.0.40
codegen_flags: <defaults>
</compile_context>

<pallas_src>
import functools

import jax
import jax.numpy as jnp
from jax.experimental import pallas as pl
from jax.experimental.pallas import tpu as pltpu

_VMEM_LIMIT = 32 * 1024 * 1024     # explicit scoped-VMEM cap (safe on v5e/v6e/v7x)
_TILE_BUDGET = 12 * 1024 * 1024    # target double-buffered pass-2 working set


def _bn_partial_stats_kernel(v_ref, psum_ref, psq_ref, *, fn, hw, tile, needs_mask):
    """Per-batch, per-channel partial sum / sum-of-squares of y (= fn(x) or y)."""
    j = pl.program_id(1)

    @pl.when(j == 0)
    def _():
        psum_ref[...] = jnp.zeros_like(psum_ref)
        psq_ref[...] = jnp.zeros_like(psq_ref)

    v = v_ref[...].astype(jnp.float32)                    # (1, C, tile)
    y = fn(v) if fn is not None else v
    if needs_mask:                                        # ragged last spatial tile
        lane = jax.lax.broadcasted_iota(jnp.int32, y.shape, 2)
        y = jnp.where(lane < (hw - j * tile), y, 0.0)
    psum_ref[...] += jnp.sum(y, axis=2, keepdims=True)    # lane reduce (XLU)
    psq_ref[...] += jnp.sum(y * y, axis=2, keepdims=True)


def _bn_apply_kernel(y_ref, x_ref, scale_ref, shift_ref, o_ref):
    """o = y * scale + shift + x   (precomputed y, per-channel scale/shift)."""
    y = y_ref[...].astype(jnp.float32)
    x = x_ref[...].astype(jnp.float32)
    o_ref[...] = (y * scale_ref[...] + shift_ref[...] + x).astype(o_ref.dtype)


def _bn_apply_fused_kernel(x_ref, scale_ref, shift_ref, o_ref, *, fn):
    """o = fn(x) * scale + shift + x   (elementwise fn recomputed in-kernel)."""
    x = x_ref[...].astype(jnp.float32)
    y = fn(x)
    o_ref[...] = (y * scale_ref[...] + shift_ref[...] + x).astype(o_ref.dtype)


def _pick_hw_tile(hw, c, itemsize):
    """Largest lane tile whose pass-2 working set (3 streams x 2 buffers) fits."""
    if hw <= 512:
        return hw                                 # full extent: no 128-divisibility needed
    per_lane = 6 * c * itemsize
    max_tile = max(128, (_TILE_BUDGET // per_lane) // 128 * 128)
    return int(min(2048, max_tile, (hw // 128) * 128))


@functools.partial(jax.jit, static_argnames=("fn", "eps", "hw_tile"))
def batch_norm_residual(x, gamma, beta, y=None, *, fn=None, eps=1e-5, hw_tile=None):
    """out = BatchNorm2d(gamma, beta, batch stats, eps)(fn(x)) + x   (NCHW in/out).

    Pass either `y = fn(x)` precomputed (arbitrary sub-module), or an elementwise
    `fn` to fuse its evaluation into both kernels (y never hits HBM).
    """
    assert (y is None) != (fn is None), "pass exactly one of `y` or `fn`"
    B, C, H, W = x.shape
    hw = H * W
    n = B * hw
    itemsize = jnp.dtype(x.dtype).itemsize

    # Free, contiguous views: channels -> sublanes, spatial -> lanes.
    x3 = x.reshape(B, C, hw)
    y3 = None if y is None else y.reshape(B, C, hw)

    tile = min(hw, hw_tile) if hw_tile is not None else _pick_hw_tile(hw, C, itemsize)
    assert tile == hw or tile % 128 == 0, "hw_tile must be a multiple of 128 (or == H*W)"
    num_hw = -(-hw // tile)
    needs_mask = (hw % tile) != 0

    data_spec = pl.BlockSpec((1, C, tile), lambda b, j: (b, 0, j))
    perb_chan_spec = pl.BlockSpec((1, C, 1), lambda b, j: (b, 0, 0))
    bcast_chan_spec = pl.BlockSpec((1, C, 1), lambda b, j: (0, 0, 0))

    # ---- Pass 1: per-batch per-channel partial sums (batch axis "parallel") ------
    stats_kernel = functools.partial(
        _bn_partial_stats_kernel, fn=fn, hw=hw, tile=tile, needs_mask=needs_mask)
    psum, psq = pl.pallas_call(
        stats_kernel,
        out_shape=(jax.ShapeDtypeStruct((B, C, 1), jnp.float32),
                   jax.ShapeDtypeStruct((B, C, 1), jnp.float32)),
        grid_spec=pltpu.PrefetchScalarGridSpec(
            num_scalar_prefetch=0,
            grid=(B, num_hw),
            in_specs=[data_spec],
            out_specs=(perb_chan_spec, perb_chan_spec)),
        compiler_params=pltpu.CompilerParams(
            dimension_semantics=("parallel", "arbitrary"),
            vmem_limit_bytes=_VMEM_LIMIT),
    )(x3 if fn is not None else y3)

    # ---- Tiny O(B*C) finalize in plain jnp: mean / var / scale / shift -----------
    g32 = gamma.astype(jnp.float32)
    b32 = beta.astype(jnp.float32)
    mean = jnp.sum(psum[..., 0], axis=0) / n                              # (C,)
    var = jnp.maximum(jnp.sum(psq[..., 0], axis=0) / n - mean * mean, 0.0)
    scale = g32 * jax.lax.rsqrt(var + eps)                                # (C,)
    shift = b32 - mean * scale
    scale = scale.reshape(1, C, 1)
    shift = shift.reshape(1, C, 1)

    # ---- Pass 2: fused normalize + affine + residual (fully parallel) ------------
    if fn is None:
        apply_kernel = _bn_apply_kernel
        operands = (y3, x3, scale, shift)
        in_specs = [data_spec, data_spec, bcast_chan_spec, bcast_chan_spec]
    else:
        apply_kernel = functools.partial(_bn_apply_fused_kernel, fn=fn)
        operands = (x3, scale, shift)
        in_specs = [data_spec, bcast_chan_spec, bcast_chan_spec]

    out3 = pl.pallas_call(
        apply_kernel,
        out_shape=jax.ShapeDtypeStruct((B, C, hw), x.dtype),
        grid_spec=pltpu.PrefetchScalarGridSpec(
            num_scalar_prefetch=0,
            grid=(B, num_hw),
            in_specs=in_specs,
            out_specs=data_spec),
        compiler_params=pltpu.CompilerParams(
            dimension_semantics=("parallel", "parallel"),
            vmem_limit_bytes=_VMEM_LIMIT),
    )(*operands)

    return out3.reshape(B, C, H, W)


def batch_norm_residual_ref(y, x, gamma, beta, eps=1e-5):
    """Pure-JAX reference: train-mode BatchNorm2d(y) + x (channels-first)."""
    mean = y.mean(axis=(0, 2, 3), keepdims=True)
    var = ((y - mean) ** 2).mean(axis=(0, 2, 3), keepdims=True)   # biased variance
    y_hat = (y - mean) * jax.lax.rsqrt(var + eps)
    return y_hat * gamma.reshape(1, -1, 1, 1) + beta.reshape(1, -1, 1, 1) + x


if __name__ == "__main__":
    key = jax.random.PRNGKey(0)
    kx, kg, kb, kx2, kg2, kb2 = jax.random.split(key, 6)

    # `fn` is an arbitrary wrapped sub-module in the PyTorch spec; an elementwise
    # GELU in JAX stands in for it here.
    act = jax.nn.gelu

    # --- Small shape (exercise single-tile path + fused-fn path) -----------------
    B, C, H, W = 2, 4, 16, 16
    x = jax.random.normal(kx, (B, C, H, W), jnp.float32)
    gamma = jax.random.uniform(kg, (C,), jnp.float32, 0.5, 1.5)
    beta = jax.random.uniform(kb, (C,), jnp.float32, -0.5, 0.5)
    y = act(x)
    ref = batch_norm_residual_ref(y, x, gamma, beta)

    out_fused = jax.block_until_ready(batch_norm_residual(x, gamma, beta, fn=act))
    out_generic = jax.block_until_ready(batch_norm_residual(x, gamma, beta, y=y))
    assert out_fused.shape == x.shape and out_generic.shape == x.shape
    assert jnp.allclose(out_fused, ref, atol=1e-4, rtol=1e-4), "fused path mismatch"
    assert jnp.allclose(out_generic, ref, atol=1e-4, rtol=1e-4), "generic path mismatch"

    # --- Ragged spatial extent (H*W = 625 > 512, not a multiple of 128) ----------
    B2, C2, H2, W2 = 2, 8, 25, 25
    x2 = jax.random.normal(kx2, (B2, C2, H2, W2), jnp.float32)
    gamma2 = jax.random.uniform(kg2, (C2,), jnp.float32, 0.5, 1.5)
    beta2 = jax.random.uniform(kb2, (C2,), jnp.float32, -0.5, 0.5)
    y2 = act(x2)
    ref2 = batch_norm_residual_ref(y2, x2, gamma2, beta2)
    out2 = jax.block_until_ready(batch_norm_residual(x2, gamma2, beta2, y=y2))
    assert out2.shape == x2.shape
    assert jnp.allclose(out2, ref2, atol=1e-4, rtol=1e-4), "ragged-tile path mismatch"

    print("KERNEL_OK")
</pallas_src>

<mosaic_0001>
module attributes {stable_mosaic.version = 11 : i64} {
  func.func @_bn_partial_stats_kernel(%arg0: i32, %arg1: i32, %arg2: memref<1x4x256xf32, #tpu.memory_space<vmem>>, %arg3: memref<1x4x1xf32, #tpu.memory_space<vmem>>, %arg4: memref<1x4x1xf32, #tpu.memory_space<vmem>>) attributes {dimension_semantics = [#tpu.dimension_semantics<parallel>, #tpu.dimension_semantics<arbitrary>], iteration_bounds = array<i64: 2, 1>, scalar_prefetch = 0 : i64, scratch_operands = 0 : i64, tpu.core_type = #tpu.core_type<tc>, window_params = [{transform_indices = @transform_0, window_bounds = array<i64: 1, 4, 256>}, {transform_indices = @transform_1, window_bounds = array<i64: 1, 4, 1>}, {transform_indices = @transform_2, window_bounds = array<i64: 1, 4, 1>}]} {
    %c0_i32 = arith.constant 0 : i32
    %0 = arith.cmpi eq, %arg1, %c0_i32 : i32
    %1 = arith.extui %0 : i1 to i32
    %c0_i32_0 = arith.constant 0 : i32
    %2 = arith.cmpi ne, %1, %c0_i32_0 : i32
    scf.if %2 {
      %cst_20 = arith.constant 0.000000e+00 : f32
      %28 = vector.broadcast %cst_20 : f32 to vector<1x4x1xf32>
      %c0_21 = arith.constant 0 : index
      %c0_22 = arith.constant 0 : index
      %c0_23 = arith.constant 0 : index
      %29 = vector.load %arg3[%c0_21, %c0_22, %c0_23] : memref<1x4x1xf32, #tpu.memory_space<vmem>>, vector<1x4x1xf32>
      tpu.vector_store %arg3[%c0_21, %c0_22, %c0_23], %28 {strides = array<i32>} : memref<1x4x1xf32, #tpu.memory_space<vmem>>, vector<1x4x1xf32>,
      %cst_24 = arith.constant 0.000000e+00 : f32
      %30 = vector.broadcast %cst_24 : f32 to vector<1x4x1xf32>
      %c0_25 = arith.constant 0 : index
      %c0_26 = arith.constant 0 : index
      %c0_27 = arith.constant 0 : index
      %31 = vector.load %arg4[%c0_25, %c0_26, %c0_27] : memref<1x4x1xf32, #tpu.memory_space<vmem>>, vector<1x4x1xf32>
      tpu.vector_store %arg4[%c0_25, %c0_26, %c0_27], %30 {strides = array<i32>} : memref<1x4x1xf32, #tpu.memory_space<vmem>>, vector<1x4x1xf32>,
    } else {
    }
    %c0 = arith.constant 0 : index
    %c0_1 = arith.constant 0 : index
    %c0_2 = arith.constant 0 : index
    %3 = vector.load %arg2[%c0, %c0_1, %c0_2] : memref<1x4x256xf32, #tpu.memory_space<vmem>>, vector<1x4x256xf32>
    %4 = arith.mulf %3, %3 : vector<1x4x256xf32>
    %5 = arith.mulf %3, %4 : vector<1x4x256xf32>
    %cst = arith.constant 4.471500e-02 : f32
    %6 = vector.broadcast %cst : f32 to vector<1x4x256xf32>
    %7 = arith.mulf %6, %5 : vector<1x4x256xf32>
    %8 = arith.addf %3, %7 : vector<1x4x256xf32>
    %cst_3 = arith.constant 0.797884583 : f32
    %9 = vector.broadcast %cst_3 : f32 to vector<1x4x256xf32>
    %10 = arith.mulf %9, %8 : vector<1x4x256xf32>
    %11 = math.tanh %10 : vector<1x4x256xf32>
    %cst_4 = arith.constant 1.000000e+00 : f32
    %12 = vector.broadcast %cst_4 : f32 to vector<1x4x256xf32>
    %13 = arith.addf %12, %11 : vector<1x4x256xf32>
    %cst_5 = arith.constant 5.000000e-01 : f32
    %14 = vector.broadcast %cst_5 : f32 to vector<1x4x256xf32>
    %15 = arith.mulf %14, %13 : vector<1x4x256xf32>
    %16 = arith.mulf %3, %15 : vector<1x4x256xf32>
    %c0_6 = arith.constant 0 : index
    %c0_7 = arith.constant 0 : index
    %c0_8 = arith.constant 0 : index
    %17 = vector.load %arg3[%c0_6, %c0_7, %c0_8] : memref<1x4x1xf32, #tpu.memory_space<vmem>>, vector<1x4x1xf32>
    %cst_9 = arith.constant dense<0.000000e+00> : vector<1x4xf32>
    %18 = vector.multi_reduction <add>, %16, %cst_9 [2] : vector<1x4x256xf32> to vector<1x4xf32>
    %19 = vector.shape_cast %18 : vector<1x4xf32> to vector<1x4x1xf32>
    %20 = arith.addf %17, %19 : vector<1x4x1xf32>
    %c0_10 = arith.constant 0 : index
    %c0_11 = arith.constant 0 : index
    %c0_12 = arith.constant 0 : index
    %21 = vector.load %arg3[%c0_10, %c0_11, %c0_12] : memref<1x4x1xf32, #tpu.memory_space<vmem>>, vector<1x4x1xf32>
    tpu.vector_store %arg3[%c0_10, %c0_11, %c0_12], %20 {strides = array<i32>} : memref<1x4x1xf32, #tpu.memory_space<vmem>>, vector<1x4x1xf32>,
    %c0_13 = arith.constant 0 : index
    %c0_14 = arith.constant 0 : index
    %c0_15 = arith.constant 0 : index
    %22 = vector.load %arg4[%c0_13, %c0_14, %c0_15] : memref<1x4x1xf32, #tpu.memory_space<vmem>>, vector<1x4x1xf32>
    %23 = arith.mulf %16, %16 : vector<1x4x256xf32>
    %cst_16 = arith.constant dense<0.000000e+00> : vector<1x4xf32>
    %24 = vector.multi_reduction <add>, %23, %cst_16 [2] : vector<1x4x256xf32> to vector<1x4xf32>
    %25 = vector.shape_cast %24 : vector<1x4xf32> to vector<1x4x1xf32>
    %26 = arith.addf %22, %25 : vector<1x4x1xf32>
    %c0_17 = arith.constant 0 : index
    %c0_18 = arith.constant 0 : index
    %c0_19 = arith.constant 0 : index
    %27 = vector.load %arg4[%c0_17, %c0_18, %c0_19] : memref<1x4x1xf32, #tpu.memory_space<vmem>>, vector<1x4x1xf32>
    tpu.vector_store %arg4[%c0_17, %c0_18, %c0_19], %26 {strides = array<i32>} : memref<1x4x1xf32, #tpu.memory_space<vmem>>, vector<1x4x1xf32>,
    return
  }
  func.func @transform_0(%arg0: i32, %arg1: i32) -> (i32, i32, i32) {
    %c0_i32 = arith.constant 0 : i32
    %c0_i32_0 = arith.constant 0 : i32
    return %arg0, %c0_i32, %arg1 : i32, i32, i32
  }
  func.func @transform_1(%arg0: i32, %arg1: i32) -> (i32, i32, i32) {
    %c0_i32 = arith.constant 0 : i32
    %c0_i32_0 = arith.constant 0 : i32
    %c0_i32_1 = arith.constant 0 : i32
    return %arg0, %c0_i32, %c0_i32_0 : i32, i32, i32
  }
  func.func @transform_2(%arg0: i32, %arg1: i32) -> (i32, i32, i32) {
    %c0_i32 = arith.constant 0 : i32
    %c0_i32_0 = arith.constant 0 : i32
    %c0_i32_1 = arith.constant 0 : i32
    return %arg0, %c0_i32, %c0_i32_0 : i32, i32, i32
  }
}

module attributes {stable_mosaic.version = 11 : i64} {
  func.func @_bn_apply_fused_kernel(%arg0: i32, %arg1: i32, %arg2: memref<1x4x256xf32, #tpu.memory_space<vmem>>, %arg3: memref<1x4x1xf32, #tpu.memory_space<vmem>>, %arg4: memref<1x4x1xf32, #tpu.memory_space<vmem>>, %arg5: memref<1x4x256xf32, #tpu.memory_space<vmem>>) attributes {dimension_semantics = [#tpu.dimension_semantics<parallel>, #tpu.dimension_semantics<parallel>], iteration_bounds = array<i64: 2, 1>, scalar_prefetch = 0 : i64, scratch_operands = 0 : i64, tpu.core_type = #tpu.core_type<tc>, window_params = [{transform_indices = @transform_0, window_bounds = array<i64: 1, 4, 256>}, {pipeline_mode = #tpu.pipeline_mode<synchronous>, transform_indices = @transform_1, window_bounds = array<i64: 1, 4, 1>}, {pipeline_mode = #tpu.pipeline_mode<synchronous>, transform_indices = @transform_2, window_bounds = array<i64: 1, 4, 1>}, {transform_indices = @transform_3, window_bounds = array<i64: 1, 4, 256>}]} {
    %c0 = arith.constant 0 : index
    %c0_0 = arith.constant 0 : index
    %c0_1 = arith.constant 0 : index
    %0 = vector.load %arg2[%c0, %c0_0, %c0_1] : memref<1x4x256xf32, #tpu.memory_space<vmem>>, vector<1x4x256xf32>
    %1 = arith.mulf %0, %0 : vector<1x4x256xf32>
    %2 = arith.mulf %0, %1 : vector<1x4x256xf32>
    %cst = arith.constant 4.471500e-02 : f32
    %3 = vector.broadcast %cst : f32 to vector<1x4x256xf32>
    %4 = arith.mulf %3, %2 : vector<1x4x256xf32>
    %5 = arith.addf %0, %4 : vector<1x4x256xf32>
    %cst_2 = arith.constant 0.797884583 : f32
    %6 = vector.broadcast %cst_2 : f32 to vector<1x4x256xf32>
    %7 = arith.mulf %6, %5 : vector<1x4x256xf32>
    %8 = math.tanh %7 : vector<1x4x256xf32>
    %cst_3 = arith.constant 1.000000e+00 : f32
    %9 = vector.broadcast %cst_3 : f32 to vector<1x4x256xf32>
    %10 = arith.addf %9, %8 : vector<1x4x256xf32>
    %cst_4 = arith.constant 5.000000e-01 : f32
    %11 = vector.broadcast %cst_4 : f32 to vector<1x4x256xf32>
    %12 = arith.mulf %11, %10 : vector<1x4x256xf32>
    %13 = arith.mulf %0, %12 : vector<1x4x256xf32>
    %c0_5 = arith.constant 0 : index
    %c0_6 = arith.constant 0 : index
    %c0_7 = arith.constant 0 : index
    %14 = vector.load %arg3[%c0_5, %c0_6, %c0_7] : memref<1x4x1xf32, #tpu.memory_space<vmem>>, vector<1x4x1xf32>
    %15 = vector.broadcast %14 : vector<1x4x1xf32> to vector<1x4x256xf32>
    %16 = arith.mulf %13, %15 : vector<1x4x256xf32>
    %c0_8 = arith.constant 0 : index
    %c0_9 = arith.constant 0 : index
    %c0_10 = arith.constant 0 : index
    %17 = vector.load %arg4[%c0_8, %c0_9, %c0_10] : memref<1x4x1xf32, #tpu.memory_space<vmem>>, vector<1x4x1xf32>
    %18 = vector.broadcast %17 : vector<1x4x1xf32> to vector<1x4x256xf32>
    %19 = arith.addf %16, %18 : vector<1x4x256xf32>
    %20 = arith.addf %19, %0 : vector<1x4x256xf32>
    %c0_11 = arith.constant 0 : index
    %c0_12 = arith.constant 0 : index
    %c0_13 = arith.constant 0 : index
    %21 = vector.load %arg5[%c0_11, %c0_12, %c0_13] : memref<1x4x256xf32, #tpu.memory_space<vmem>>, vector<1x4x256xf32>
    tpu.vector_store %arg5[%c0_11, %c0_12, %c0_13], %20 {strides = array<i32>} : memref<1x4x256xf32, #tpu.memory_space<vmem>>, vector<1x4x256xf32>,
    return
  }
  func.func @transform_0(%arg0: i32, %arg1: i32) -> (i32, i32, i32) {
    %c0_i32 = arith.constant 0 : i32
    %c0_i32_0 = arith.constant 0 : i32
    return %arg0, %c0_i32, %arg1 : i32, i32, i32
  }
  func.func @transform_1(%arg0: i32, %arg1: i32) -> (i32, i32, i32) {
    %c0_i32 = arith.constant 0 : i32
    %c0_i32_0 = arith.constant 0 : i32
    %c0_i32_1 = arith.constant 0 : i32
    %c0_i32_2 = arith.constant 0 : i32
    return %c0_i32, %c0_i32_0, %c0_i32_1 : i32, i32, i32
  }
  func.func @transform_2(%arg0: i32, %arg1: i32) -> (i32, i32, i32) {
    %c0_i32 = arith.constant 0 : i32
    %c0_i32_0 = arith.constant 0 : i32
    %c0_i32_1 = arith.constant 0 : i32
    %c0_i32_2 = arith.constant 0 : i32
    return %c0_i32, %c0_i32_0, %c0_i32_1 : i32, i32, i32
  }
  func.func @transform_3(%arg0: i32, %arg1: i32) -> (i32, i32, i32) {
    %c0_i32 = arith.constant 0 : i32
    %c0_i32_0 = arith.constant 0 : i32
    return %arg0, %c0_i32, %arg1 : i32, i32, i32
  }
}

</mosaic_0001>

<bundles_post_ra>
// kernel: batch_norm_residual.2
= control target key start
LH: loop header
LB: loop body
LE: loop exit
PB: predicated region body
PF: predicated region fallthrough
CT: control target
= control target key end

     0   :  { %s406_s9 = smov 0   ;;  %s408_s10 = smov 0   ;;  %s446_s0 = inlined_call_operand.vmem [shape: f32[2,4,256], index: 0, kind: input, shape index: {}]   ;;  %s447_s1 = inlined_call_operand.vmem [shape: f32[2,4,1], index: 1, kind: output, shape index: {0}]   ;;  %s448_s2 = inlined_call_operand.vmem [shape: f32[2,4,1], index: 2, kind: output, shape index: {1}]  }
   0x1   :  { %s410_s11 = smov 0  }
   0x2 LB: > { %s25_s12 = sadd.s32 1, %s384_s10  ;;  %p331_p0 = scmp.ge.s32.totalorder %s388_s11, 1  ;;  %s388_s11 = sphi %s410_s11, %s13_s11   ;;  %s384_s10 = sphi %s408_s10, %s450_s10   ;;  %s380_s9 = sphi %s406_s9, %s449_s9  }
   0x3   : > { %p27_p1 = scmp.ge.s32.totalorder %s25_s12, 2  ;;  %p134_p2 = scmp.lt.s32.totalorder %s388_s11, 3 }
   0x5   : > { %s452_s12 = smov (%p27_p1, %s25_s12), 0  ;;  %p135_p3 = pnand %p331_p0, %p134_p2 }
   0x6   : > { %p164_p4 = scmp.lt.s32.totalorder (!%p135_p3), %s380_s9, 1 }
   0x7   : > { %138 = sbr.rel (%p135_p3) target bundleno = 177 (0xb1), region = 24 }
   0xc   : > { %s454_s9 = smov (!%p164_p4, %s380_s9), 1  ;;  %vm185_vm0 = vcmask 3072   ;;  %v390_v6 = vmov 0.0   ;;  %vm205_vm1 = vcmask 1043456  }
   0xd   : > { %s338_s13 = sshll.u32 %s454_s9, 3  ;;  %s334_s17 = sshll.u32 %s454_s9, 2 }
   0xe   : > { %s171_s16 = scalar_lea.vmem %s446_s0, %s338_s13  ;;  %s176_s20 = scalar_lea.vmem %s447_s1, %s334_s17 }
   0xf   : > { %v188_v0 = vld [vmem:[%s171_s16] sm:$0xff]  ;;  %186 = vst.msk [vmem:[%s176_s20] sm:$0xf] %vm185_vm0, %v390_v6  ;;  %s180_s23 = scalar_lea.vmem %s448_s2, %s334_s17 }
  0x10   : > { %v189_v1 = vmul.f32 %v188_v0, %v188_v0  ;;  %187 = vst.msk [vmem:[%s180_s23] sm:$0xf] %vm185_vm0, %v390_v6 }
  0x12   : > { %v190_v2 = vmul.f32 %v189_v1, %v188_v0 }
  0x14   : > { %v191_v3 = vmul.f32 0.044715, %v190_v2 }
  0x16   : > { %v192_v4 = vadd.f32 %v191_v3, %v188_v0  ;;  %v198_v22 = vld [vmem:[%s176_s20] sm:$0xf] }
  0x17   : > { %v214_v25 = vld [vmem:[%s180_s23] sm:$0xf] }
  0x18   : > { %v193_v5 = vmul.f32 0.7978846, %v192_v4 }
  0x1a   : > { %364 = vtanh.f32 %v193_v5 }
  0x20   : > { %v365_v7 = vpop.eup %364 }
  0x21   : > { %v195_v8 = vadd.f32 1.0, %v365_v7 }
  0x23   : > { %v196_v9 = vmul.f32 0.5, %v195_v8 }
  0x25   : > { %v197_v10 = vmul.f32 %v196_v9, %v188_v0 }
  0x27   : > { %200 = vst [vmem:[#allocation1] ss:$2 sm:$0xff] %v197_v10  ;;  %v215_v11 = vmul.f32 %v197_v10, %v197_v10 }
  0x2e   : > { %v201_v12 = vld.sshfl [vmem:[#allocation1] sm:$0xff pattern:$0x75316420]  ;;  %v202_v13 = vld.sshfl [vmem:[#allocation1 + $0x8] sm:$0xff pattern:$0x75316420] }
  0x2f   : > { %v206_v14 = vsel %vm205_vm1, %v201_v12, 0.0  ;;  %v207_v15 = vsel %vm205_vm1, %v202_v13, 0.0  ;;  %217 = vst [vmem:[#allocation1] ss:$2 sm:$0xff] %v215_v11 }
  0x30   : > { %v208_v16 = vadd.f32 %v207_v15, %v206_v14 }
  0x32   : > { %209 = vadd.xlane.f32.xlu0 %v208_v16 }
  0x36   : > { %v218_v17 = vld.sshfl [vmem:[#allocation1] sm:$0xff pattern:$0x75316420]  ;;  %v219_v18 = vld.sshfl [vmem:[#allocation1 + $0x8] sm:$0xff pattern:$0x75316420] }
  0x37   : > { %v222_v19 = vsel %vm205_vm1, %v218_v17, 0.0  ;;  %v223_v20 = vsel %vm205_vm1, %v219_v18, 0.0 }
  0x38   : > { %v224_v21 = vadd.f32 %v223_v20, %v222_v19 }
  0x3a   : > { %225 = vadd.xlane.f32.xlu0 %v224_v21 }
  0xa5   : > { %v210_v23 = vpop.xlane.xlu0 %209 }
  0xa6   : > { %v211_v24 = vadd.f32 %v210_v23, %v198_v22 }
  0xa8   : > { %213 = vst.msk [vmem:[%s176_s20] sm:$0xf] %vm185_vm0, %v211_v24 }
  0xad   : > { %v226_v26 = vpop.xlane.xlu0 %225 }
  0xae   : > { %v227_v27 = vadd.f32 %v226_v26, %v214_v25 }
  0xb0   : > { %228 = vst.msk [vmem:[%s180_s23] sm:$0xf] %vm185_vm0, %v227_v27 }
  0xb1 PF: > { %s13_s11 = sadd.s32 1, %s388_s11   ;;  %s449_s9 = smov %s384_s10 }
  0xb2   : > { %p10_p5 = scmp.ge.s32.totalorder %s13_s11, 4   ;;  %s450_s10 = smov %s452_s12 }
  0xb4   :  { %12 = sbr.rel (!%p10_p5) target bundleno = 2 (0x2), region = 70 }

// kernel: batch_norm_residual.3
= control target key start
LH: loop header
LB: loop body
LE: loop exit
PB: predicated region body
PF: predicated region fallthrough
CT: control target
= control target key end

     0   :  { %s419_s12 = smov 0   ;;  %s421_s13 = smov 0   ;;  %s458_s0 = inlined_call_operand.vmem [shape: f32[2,4,256], index: 0, kind: input, shape index: {}]   ;;  %s459_s1 = inlined_call_operand.vmem [shape: f32[1,4,1], index: 1, kind: input, shape index: {}]   ;;  %s460_s2 = inlined_call_operand.vmem [shape: f32[1,4,1], index: 2, kind: input, shape index: {}]   ;;  %s461_s3 = inlined_call_operand.vmem [shape: f32[2,4,256], index: 3, kind: output, shape index: {}]  }
   0x1   :  { %s423_s14 = smov 0  }
   0x2 LB: > { %s25_s15 = sadd.s32 1, %s391_s13  ;;  %p335_p0 = scmp.ge.s32.totalorder %s395_s14, 1  ;;  %s395_s14 = sphi %s423_s14, %s13_s14   ;;  %s391_s13 = sphi %s421_s13, %s463_s13   ;;  %s387_s12 = sphi %s419_s12, %s462_s12  }
   0x3   : > { %p27_p1 = scmp.ge.s32.totalorder %s25_s15, 2  ;;  %p158_p2 = scmp.lt.s32.totalorder %s395_s14, 3 }
   0x5   : > { %s465_s15 = smov (%p27_p1, %s25_s15), 0  ;;  %p159_p3 = pnand %p335_p0, %p158_p2 }
   0x6   : > { %p191_p4 = scmp.lt.s32.totalorder (!%p159_p3), %s387_s12, 1 }
   0x7   : > { %162 = sbr.rel (%p159_p3) target bundleno = 144 (0x90), region = 32 }
   0xc   : > { %v220_v0 = vld [vmem:[%s459_s1] sm:$0xf]  ;;  %v397_v1 = vmov 0   ;;  %s467_s12 = smov (!%p191_p4, %s387_s12), 1  ;;  %v398_v10 = vmov 839922192  }
   0xd   : > { %370 = vset.pattern.permute.xlu0 %v397_v1  ;;  %v231_v2 = vld [vmem:[%s460_s2] sm:$0xf]  ;;  %s342_s20 = sshll.u32 %s467_s12, 3  ;;  %v226_v11 = vunpack.c.l.s4 %v398_v10 }
   0xe   : > { %223 = vperm.xlu0 %370, %v220_v0   ;;  %s198_s23 = scalar_lea.vmem %s458_s0, %s342_s20  ;;  %s208_s26 = scalar_lea.vmem %s461_s3, %s342_s20 }
   0xf   : > { %v210_v3 = vld [vmem:[%s198_s23] sm:$0xff]  ;;  %v227_v14 = vunpack.c.0.s8 %v226_v11 }
  0x10   : > { %v211_v4 = vmul.f32 %v210_v3, %v210_v3 }
  0x12   : > { %v212_v5 = vmul.f32 %v211_v4, %v210_v3 }
  0x14   : > { %v213_v6 = vmul.f32 0.044715, %v212_v5 }
  0x16   : > { %234 = vperm.xlu0 %370, %v231_v2   ;;  %v214_v7 = vadd.f32 %v213_v6, %v210_v3 }
  0x18   : > { %v215_v8 = vmul.f32 0.7978846, %v214_v7 }
  0x1a   : > { %371 = vtanh.f32 %v215_v8 }
  0x20   : > { %v372_v9 = vpop.eup %371 }
  0x21   : > { %v217_v12 = vadd.f32 1.0, %v372_v9 }
  0x23   : > { %v218_v15 = vmul.f32 0.5, %v217_v12 }
  0x25   : > { %v219_v16 = vmul.f32 %v218_v15, %v210_v3 }
  0x80   : > { %v224_v13 = vpop.permute.xlu0 %223 }
  0x81   : > { %v228_v17 = vperm.slane %v224_v13, %v227_v14 }
  0x83   : > { %v230_v19 = vmul.f32 %v228_v17, %v219_v16 }
  0x88   : > { %v235_v18 = vpop.permute.xlu0 %234 }
  0x89   : > { %v239_v20 = vperm.slane %v235_v18, %v227_v14 }
  0x8b   : > { %v241_v21 = vadd.f32 %v239_v20, %v230_v19 }
  0x8d   : > { %v242_v22 = vadd.f32 %v241_v21, %v210_v3 }
  0x8f   : > { %243 = vst [vmem:[%s208_s26] sm:$0xff] %v242_v22 }
  0x90 PF: > { %s13_s14 = sadd.s32 1, %s395_s14   ;;  %s462_s12 = smov %s391_s13 }
  0x91   : > { %p10_p5 = scmp.ge.s32.totalorder %s13_s14, 4   ;;  %s463_s13 = smov %s465_s15 }
  0x93   :  { %12 = sbr.rel (!%p10_p5) target bundleno = 2 (0x2), region = 62 }

</bundles_post_ra>
